<compile_context>
chip_gen: v5e
topology: v5e:2x2
jax: 0.10.0
libtpu: 0.0.40
codegen_flags: <defaults>
</compile_context>

<pallas_src>
import functools

import jax
import jax.numpy as jnp
from jax.experimental import pallas as pl
from jax.experimental.pallas import tpu as pltpu


def _mh_wide_attention_kernel(wqT_ref, wkT_ref, wvT_ref, wzT_ref, bz_ref,
                              xq_ref, xk_ref, xv_ref, mask_ref,
                              out_ref, attn_ref, zcat_ref):
    """One grid step == one batch tile, ALL heads.

    Block shapes:
      wqT_ref/wkT_ref/wvT_ref : (D, H*D)   all-head pre-transposed weights
                                           (1/sqrt(D) folded into wqT)
      wzT_ref                 : (H*D, D)   output projection weight, pre-transposed
      bz_ref                  : (1, D)     output projection bias
      xq_ref/xk_ref/xv_ref    : (Bt*S, D)  flattened activations for this batch tile
      mask_ref                : (Bt, S, S) int8 0/1 mask
      out_ref                 : (Bt*S, D)
      attn_ref                : (H, Bt, S, S)
      zcat_ref (scratch)      : (Bt*S, H*D) per-head contexts, concatenated in VMEM
    """
    H, Bt, S, _ = attn_ref.shape
    D = xq_ref.shape[-1]

    # All-head projections: single big MXU matmuls (N = H*D).
    q_all = jnp.dot(xq_ref[...], wqT_ref[...], preferred_element_type=jnp.float32)
    k_all = jnp.dot(xk_ref[...], wkT_ref[...], preferred_element_type=jnp.float32)
    v_all = jnp.dot(xv_ref[...], wvT_ref[...], preferred_element_type=jnp.float32)

    keep = mask_ref[...] != 0                      # direct int8 compare (no cast pass)
    neg_inf = jnp.float32(-1000000.0)

    for h in range(H):                             # static unroll over heads
        sl = slice(h * D, (h + 1) * D)
        q = q_all[:, sl].reshape(Bt, S, D)         # scale already folded into Wq^T
        k = k_all[:, sl].reshape(Bt, S, D)
        v = v_all[:, sl].reshape(Bt, S, D)

        scores = jnp.einsum("bqd,bkd->bqk", q, k,
                            preferred_element_type=jnp.float32)
        scores = jnp.where(keep, scores, neg_inf)  # masked_fill(mask == 0, -1e6)

        # Numerically-stable, EXACT softmax over the last axis.
        row_max = jnp.max(scores, axis=-1, keepdims=True)
        e = jnp.exp(scores - row_max)
        denom = jnp.sum(e, axis=-1, keepdims=True)
        attn = e / denom

        attn_ref[h] = attn.astype(attn_ref.dtype)

        z = jnp.einsum("bqk,bkd->bqd", attn, v,
                       preferred_element_type=jnp.float32)
        zcat_ref[:, sl] = z.reshape(Bt * S, D)     # in-VMEM "concat"

    # Fused concat + output projection: one (Bt*S, H*D) x (H*D, D) matmul + bias.
    out = bz_ref[...] + jnp.dot(zcat_ref[...], wzT_ref[...],
                                preferred_element_type=jnp.float32)
    out_ref[...] = out.astype(out_ref.dtype)


def _choose_batch_tile(B, S, D, H, attn_bytes=4,
                       vmem_budget_bytes=24 * 1024 * 1024):
    """Largest divisor of B whose per-step working set fits the VMEM budget.

    Accounts for the double-buffered pipelined blocks (x/mask/out/attn), the
    resident (but still double-buffered) weight blocks, and the in-kernel f32
    temporaries (q/k/v_all, zcat scratch, score working set).  Also caps the tile
    so the parallel batch axis keeps >= 2 grid steps (megacore sharding on v7x).
    """
    weight_bytes = 2 * (4 * H * D * D * 4 + D * 4)          # WqT/WkT/WvT/WzT + bias
    per_b = (2 * (3 * S * D * 4                             # xq/xk/xv blocks
                  + S * S * 1                               # int8 mask block
                  + S * D * 4                               # out block
                  + H * S * S * attn_bytes)                 # attn block
             + 4 * H * S * D * 4                            # q/k/v_all + zcat scratch
             + 4 * S * S * 4)                               # score/exp temporaries
    budget = max(vmem_budget_bytes - weight_bytes, per_b)
    bt = max(1, min(B, budget // per_b))
    if B >= 2:
        bt = min(bt, B // 2)                                # >= 2 parallel grid steps
    bt = max(bt, 1)
    while B % bt:
        bt -= 1
    return bt


@functools.partial(jax.jit, static_argnames=("batch_tile",))
def mh_self_attention_wide(params, xin_q, xin_k, xin_v, mask=None, *, batch_tile=None):
    """Pallas wrapper mirroring MH_SelfAttentionWide.forward.

    params:
      'Wq','Wk','Wv' : (H, D, D)  stacked per-head nn.Linear weights (PyTorch layout)
      'Wz'           : (D, H*D)   output projection weight (PyTorch layout)
      'bz'           : (D,)       output projection bias
    Returns (out, attn_dict): out (B, S, D), attn_dict['h{h}'] (B, S, S).
    """
    wq, wk, wv = params["Wq"], params["Wk"], params["Wv"]
    wz, bz = params["Wz"], params["bz"]
    H, D, _ = wq.shape
    B, S, _ = xin_q.shape
    assert wz.shape == (D, H * D)

    f32 = jnp.float32
    scale = 1.0 / float(D) ** 0.5

    # Per-head (H, Dout, Din) -> all-head transposed (Din, H*Dout); done ONCE.
    # Attention scale 1/sqrt(D) is folded into Wq^T (saves a (Bt,S,S) VPU pass).
    wqT = (jnp.transpose(wq, (2, 0, 1)).reshape(D, H * D) * scale).astype(f32)
    wkT = jnp.transpose(wk, (2, 0, 1)).reshape(D, H * D).astype(f32)
    wvT = jnp.transpose(wv, (2, 0, 1)).reshape(D, H * D).astype(f32)
    wzT = jnp.transpose(wz, (1, 0)).astype(f32)              # (H*D, D)
    bz2 = bz.reshape(1, D).astype(f32)

    if mask is None:
        mask_i8 = jnp.ones((B, S, S), dtype=jnp.int8)
    else:
        mask_i8 = (mask != 0).astype(jnp.int8)

    # Lane/sublane-friendly flattened activations.
    xq2 = xin_q.reshape(B * S, D).astype(f32)
    xk2 = xin_k.reshape(B * S, D).astype(f32)
    xv2 = xin_v.reshape(B * S, D).astype(f32)

    Bt = batch_tile if batch_tile is not None else _choose_batch_tile(B, S, D, H)
    assert B % Bt == 0, "batch tile must divide the batch size"
    grid = (B // Bt,)

    w_in_spec = pl.BlockSpec((D, H * D), lambda b: (0, 0))    # resident (fetched once)
    wz_spec = pl.BlockSpec((H * D, D), lambda b: (0, 0))
    bias_spec = pl.BlockSpec((1, D), lambda b: (0, 0))
    x_spec = pl.BlockSpec((Bt * S, D), lambda b: (b, 0))
    mask_spec = pl.BlockSpec((Bt, S, S), lambda b: (b, 0, 0))
    out_spec = pl.BlockSpec((Bt * S, D), lambda b: (b, 0))
    attn_spec = pl.BlockSpec((H, Bt, S, S), lambda b: (0, b, 0, 0))

    flops = 8 * B * S * H * D * D + 4 * B * H * S * S * D
    transcendentals = B * H * S * S
    bytes_accessed = (3 * B * S * D * 4 + B * S * S
                      + 4 * H * D * D * 4 + D * 4
                      + B * S * D * 4 + H * B * S * S * 4)

    out_flat, attn = pl.pallas_call(
        _mh_wide_attention_kernel,
        out_shape=(
            jax.ShapeDtypeStruct((B * S, D), jnp.float32),    # fused output (pre-reshape)
            jax.ShapeDtypeStruct((H, B, S, S), jnp.float32),  # per-head attention weights
        ),
        grid_spec=pltpu.PrefetchScalarGridSpec(
            num_scalar_prefetch=0,
            grid=grid,
            in_specs=[w_in_spec, w_in_spec, w_in_spec, wz_spec, bias_spec,
                      x_spec, x_spec, x_spec, mask_spec],
            out_specs=[out_spec, attn_spec],
            scratch_shapes=[pltpu.VMEM((Bt * S, H * D), jnp.float32)],
        ),
        compiler_params=pltpu.CompilerParams(
            dimension_semantics=("parallel",),
            vmem_limit_bytes=48 * 1024 * 1024),
        cost_estimate=pl.CostEstimate(flops=flops,
                                      transcendentals=transcendentals,
                                      bytes_accessed=bytes_accessed),
    )(wqT, wkT, wvT, wzT, bz2, xq2, xk2, xv2, mask_i8)

    out = out_flat.reshape(B, S, D)
    attn_dict = {f"h{h}": attn[h] for h in range(H)}
    return out, attn_dict


def _reference(params, xq, xk, xv, mask=None):
    """Pure-JAX reference matching the PyTorch forward exactly (full f32 precision)."""
    H, D, _ = params["Wq"].shape
    hp = jax.lax.Precision.HIGHEST
    outs, attns = [], {}
    scale = D ** 0.25
    for h in range(H):
        q = jnp.einsum("bsi,oi->bso", xq, params["Wq"][h], precision=hp)
        k = jnp.einsum("bsi,oi->bso", xk, params["Wk"][h], precision=hp)
        v = jnp.einsum("bsi,oi->bso", xv, params["Wv"][h], precision=hp)
        a = jnp.einsum("bsd,btd->bst", q / scale, k / scale, precision=hp)
        if mask is not None:
            a = jnp.where(mask == 0, -1000000.0, a)
        an = jax.nn.softmax(a, axis=2)
        outs.append(jnp.einsum("bst,btd->bsd", an, v, precision=hp))
        attns[f"h{h}"] = an
    cat = jnp.concatenate(outs, axis=-1)
    out = jnp.einsum("bsk,ok->bso", cat, params["Wz"], precision=hp) + params["bz"]
    return out, attns


if __name__ == "__main__":
    B, S, D, H = 2, 8, 32, 4

    key = jax.random.PRNGKey(0)
    k_wq, k_wk, k_wv, k_wz, k_bz, k_q, k_k, k_v, k_m = jax.random.split(key, 9)

    params = {
        "Wq": jax.random.normal(k_wq, (H, D, D), dtype=jnp.float32) * 0.1,
        "Wk": jax.random.normal(k_wk, (H, D, D), dtype=jnp.float32) * 0.1,
        "Wv": jax.random.normal(k_wv, (H, D, D), dtype=jnp.float32) * 0.1,
        "Wz": jax.random.normal(k_wz, (D, H * D), dtype=jnp.float32) * 0.1,
        "bz": jax.random.normal(k_bz, (D,), dtype=jnp.float32) * 0.1,
    }

    xin_q = jax.random.normal(k_q, (B, S, D), dtype=jnp.float32)
    xin_k = jax.random.normal(k_k, (B, S, D), dtype=jnp.float32)
    xin_v = jax.random.normal(k_v, (B, S, D), dtype=jnp.float32)

    # 0/1 mask with at least one 1 per row (force the diagonal to 1).
    mask = (jax.random.uniform(k_m, (B, S, S)) > 0.3).astype(jnp.float32)
    mask = jnp.maximum(mask, jnp.eye(S, dtype=jnp.float32)[None])

    out, attn_dict = mh_self_attention_wide(params, xin_q, xin_k, xin_v, mask)
    jax.block_until_ready((out, attn_dict))

    out_ref, attn_ref = _reference(params, xin_q, xin_k, xin_v, mask)
    assert jnp.allclose(out, out_ref, atol=1e-3, rtol=1e-3), "output mismatch"
    for h in range(H):
        assert jnp.allclose(attn_dict[f"h{h}"], attn_ref[f"h{h}"],
                            atol=1e-3, rtol=1e-3), f"attn mismatch for head {h}"

    print("KERNEL_OK")
</pallas_src>

<mosaic_0001>
module attributes {stable_mosaic.version = 11 : i64} {
  func.func @_mh_wide_attention_kernel(%arg0: i32, %arg1: memref<32x128xf32, #tpu.memory_space<vmem>>, %arg2: memref<32x128xf32, #tpu.memory_space<vmem>>, %arg3: memref<32x128xf32, #tpu.memory_space<vmem>>, %arg4: memref<128x32xf32, #tpu.memory_space<vmem>>, %arg5: memref<1x32xf32, #tpu.memory_space<vmem>>, %arg6: memref<8x32xf32, #tpu.memory_space<vmem>>, %arg7: memref<8x32xf32, #tpu.memory_space<vmem>>, %arg8: memref<8x32xf32, #tpu.memory_space<vmem>>, %arg9: memref<1x8x8xi8, #tpu.memory_space<vmem>>, %arg10: memref<8x32xf32, #tpu.memory_space<vmem>>, %arg11: memref<4x1x8x8xf32, #tpu.memory_space<vmem>>, %arg12: memref<8x128xf32, #tpu.memory_space<vmem>>) attributes {dimension_semantics = [#tpu.dimension_semantics<parallel>], iteration_bounds = array<i64: 2>, scalar_prefetch = 0 : i64, scratch_operands = 1 : i64, tpu.core_type = #tpu.core_type<tc>, window_params = [{pipeline_mode = #tpu.pipeline_mode<synchronous>, transform_indices = @transform_0, window_bounds = array<i64: 32, 128>}, {pipeline_mode = #tpu.pipeline_mode<synchronous>, transform_indices = @transform_1, window_bounds = array<i64: 32, 128>}, {pipeline_mode = #tpu.pipeline_mode<synchronous>, transform_indices = @transform_2, window_bounds = array<i64: 32, 128>}, {pipeline_mode = #tpu.pipeline_mode<synchronous>, transform_indices = @transform_3, window_bounds = array<i64: 128, 32>}, {pipeline_mode = #tpu.pipeline_mode<synchronous>, transform_indices = @transform_4, window_bounds = array<i64: 1, 32>}, {transform_indices = @transform_5, window_bounds = array<i64: 8, 32>}, {transform_indices = @transform_6, window_bounds = array<i64: 8, 32>}, {transform_indices = @transform_7, window_bounds = array<i64: 8, 32>}, {transform_indices = @transform_8, window_bounds = array<i64: 1, 8, 8>}, {transform_indices = @transform_9, window_bounds = array<i64: 8, 32>}, {transform_indices = @transform_10, window_bounds = array<i64: 4, 1, 8, 8>}]} {
    %c0 = arith.constant 0 : index
    %c0_0 = arith.constant 0 : index
    %0 = vector.load %arg6[%c0, %c0_0] : memref<8x32xf32, #tpu.memory_space<vmem>>, vector<8x32xf32>
    %c0_1 = arith.constant 0 : index
    %c0_2 = arith.constant 0 : index
    %1 = vector.load %arg1[%c0_1, %c0_2] : memref<32x128xf32, #tpu.memory_space<vmem>>, vector<32x128xf32>
    %cst = arith.constant dense<0.000000e+00> : vector<8x128xf32>
    %2 = tpu.matmul %0, %1, %cst {dimension_numbers = #tpu.dot_dimension_numbers<[1], [0], [0], [1], [0, 0, 1, 1], [], []>} : vector<8x32xf32>, vector<32x128xf32>, vector<8x128xf32> -> vector<8x128xf32>
    %c0_3 = arith.constant 0 : index
    %c0_4 = arith.constant 0 : index
    %3 = vector.load %arg7[%c0_3, %c0_4] : memref<8x32xf32, #tpu.memory_space<vmem>>, vector<8x32xf32>
    %c0_5 = arith.constant 0 : index
    %c0_6 = arith.constant 0 : index
    %4 = vector.load %arg2[%c0_5, %c0_6] : memref<32x128xf32, #tpu.memory_space<vmem>>, vector<32x128xf32>
    %cst_7 = arith.constant dense<0.000000e+00> : vector<8x128xf32>
    %5 = tpu.matmul %3, %4, %cst_7 {dimension_numbers = #tpu.dot_dimension_numbers<[1], [0], [0], [1], [0, 0, 1, 1], [], []>} : vector<8x32xf32>, vector<32x128xf32>, vector<8x128xf32> -> vector<8x128xf32>
    %c0_8 = arith.constant 0 : index
    %c0_9 = arith.constant 0 : index
    %6 = vector.load %arg8[%c0_8, %c0_9] : memref<8x32xf32, #tpu.memory_space<vmem>>, vector<8x32xf32>
    %c0_10 = arith.constant 0 : index
    %c0_11 = arith.constant 0 : index
    %7 = vector.load %arg3[%c0_10, %c0_11] : memref<32x128xf32, #tpu.memory_space<vmem>>, vector<32x128xf32>
    %cst_12 = arith.constant dense<0.000000e+00> : vector<8x128xf32>
    %8 = tpu.matmul %6, %7, %cst_12 {dimension_numbers = #tpu.dot_dimension_numbers<[1], [0], [0], [1], [0, 0, 1, 1], [], []>} : vector<8x32xf32>, vector<32x128xf32>, vector<8x128xf32> -> vector<8x128xf32>
    %c0_13 = arith.constant 0 : index
    %c0_14 = arith.constant 0 : index
    %c0_15 = arith.constant 0 : index
    %9 = vector.load %arg9[%c0_13, %c0_14, %c0_15] : memref<1x8x8xi8, #tpu.memory_space<vmem>>, vector<1x8x8xi8>
    %c0_i8 = arith.constant 0 : i8
    %10 = vector.broadcast %c0_i8 : i8 to vector<1x8x8xi8>
    %11 = arith.cmpi ne, %9, %10 : vector<1x8x8xi8>
    %12 = vector.extract_strided_slice %2 {offsets = [0, 0], sizes = [8, 32], strides = [1, 1]} : vector<8x128xf32> to vector<8x32xf32>
    %13 = vector.shape_cast %12 : vector<8x32xf32> to vector<1x8x32xf32>
    %14 = vector.extract_strided_slice %5 {offsets = [0, 0], sizes = [8, 32], strides = [1, 1]} : vector<8x128xf32> to vector<8x32xf32>
    %15 = vector.shape_cast %14 : vector<8x32xf32> to vector<1x8x32xf32>
    %16 = vector.extract_strided_slice %8 {offsets = [0, 0], sizes = [8, 32], strides = [1, 1]} : vector<8x128xf32> to vector<8x32xf32>
    %17 = vector.shape_cast %16 : vector<8x32xf32> to vector<1x8x32xf32>
    "tpu.trace_start"() <{level = 10 : i32, message = "bqd,bkd->bqk"}> : () -> ()
    %cst_16 = arith.constant dense<0.000000e+00> : vector<1x8x8xf32>
    %18 = tpu.matmul %13, %15, %cst_16 {dimension_numbers = #tpu.dot_dimension_numbers<[2], [2], [1], [1], [0, 0, 0, 1, 1, 1], [0], [0]>} : vector<1x8x32xf32>, vector<1x8x32xf32>, vector<1x8x8xf32> -> vector<1x8x8xf32>
    %cst_17 = arith.constant -1.000000e+06 : f32
    "tpu.trace_stop"() : () -> ()
    %19 = vector.broadcast %cst_17 : f32 to vector<1x8x8xf32>
    %20 = arith.select %11, %18, %19 : vector<1x8x8xi1>, vector<1x8x8xf32>
    %cst_18 = arith.constant dense<0xFF800000> : vector<1x8xf32>
    %21 = vector.multi_reduction <maximumf>, %20, %cst_18 [2] : vector<1x8x8xf32> to vector<1x8xf32>
    %22 = vector.shape_cast %21 : vector<1x8xf32> to vector<1x8x1xf32>
    %23 = vector.broadcast %22 : vector<1x8x1xf32> to vector<1x8x8xf32>
    %24 = arith.subf %20, %23 : vector<1x8x8xf32>
    %25 = math.exp %24 : vector<1x8x8xf32>
    %cst_19 = arith.constant dense<0.000000e+00> : vector<1x8xf32>
    %26 = vector.multi_reduction <add>, %25, %cst_19 [2] : vector<1x8x8xf32> to vector<1x8xf32>
    %27 = vector.shape_cast %26 : vector<1x8xf32> to vector<1x8x1xf32>
    %28 = vector.broadcast %27 : vector<1x8x1xf32> to vector<1x8x8xf32>
    %29 = arith.divf %25, %28 : vector<1x8x8xf32>
    %c0_20 = arith.constant 0 : index
    %c0_21 = arith.constant 0 : index
    %c0_22 = arith.constant 0 : index
    %c0_23 = arith.constant 0 : index
    %30 = vector.load %arg11[%c0_20, %c0_21, %c0_22, %c0_23] : memref<4x1x8x8xf32, #tpu.memory_space<vmem>>, vector<1x1x8x8xf32>
    %31 = vector.shape_cast %30 : vector<1x1x8x8xf32> to vector<1x8x8xf32>
    %32 = vector.shape_cast %29 : vector<1x8x8xf32> to vector<1x1x8x8xf32>
    tpu.vector_store %arg11[%c0_20, %c0_21, %c0_22, %c0_23], %32 {strides = array<i32>} : memref<4x1x8x8xf32, #tpu.memory_space<vmem>>, vector<1x1x8x8xf32>,
    "tpu.trace_start"() <{level = 10 : i32, message = "bqk,bkd->bqd"}> : () -> ()
    %cst_24 = arith.constant dense<0.000000e+00> : vector<1x8x32xf32>
    %33 = tpu.matmul %29, %17, %cst_24 {dimension_numbers = #tpu.dot_dimension_numbers<[2], [1], [1], [2], [0, 0, 0, 1, 1, 2], [0], [0]>} : vector<1x8x8xf32>, vector<1x8x32xf32>, vector<1x8x32xf32> -> vector<1x8x32xf32>
    "tpu.trace_stop"() : () -> ()
    %34 = vector.shape_cast %33 : vector<1x8x32xf32> to vector<8x32xf32>
    %c0_25 = arith.constant 0 : index
    %c0_26 = arith.constant 0 : index
    %35 = vector.load %arg12[%c0_25, %c0_26] : memref<8x128xf32, #tpu.memory_space<vmem>>, vector<8x32xf32>
    tpu.vector_store %arg12[%c0_25, %c0_26], %34 {strides = array<i32>} : memref<8x128xf32, #tpu.memory_space<vmem>>, vector<8x32xf32>,
    %36 = vector.extract_strided_slice %2 {offsets = [0, 32], sizes = [8, 32], strides = [1, 1]} : vector<8x128xf32> to vector<8x32xf32>
    %37 = vector.shape_cast %36 : vector<8x32xf32> to vector<1x8x32xf32>
    %38 = vector.extract_strided_slice %5 {offsets = [0, 32], sizes = [8, 32], strides = [1, 1]} : vector<8x128xf32> to vector<8x32xf32>
    %39 = vector.shape_cast %38 : vector<8x32xf32> to vector<1x8x32xf32>
    %40 = vector.extract_strided_slice %8 {offsets = [0, 32], sizes = [8, 32], strides = [1, 1]} : vector<8x128xf32> to vector<8x32xf32>
    %41 = vector.shape_cast %40 : vector<8x32xf32> to vector<1x8x32xf32>
    "tpu.trace_start"() <{level = 10 : i32, message = "bqd,bkd->bqk"}> : () -> ()
    %cst_27 = arith.constant dense<0.000000e+00> : vector<1x8x8xf32>
    %42 = tpu.matmul %37, %39, %cst_27 {dimension_numbers = #tpu.dot_dimension_numbers<[2], [2], [1], [1], [0, 0, 0, 1, 1, 1], [0], [0]>} : vector<1x8x32xf32>, vector<1x8x32xf32>, vector<1x8x8xf32> -> vector<1x8x8xf32>
    %cst_28 = arith.constant -1.000000e+06 : f32
    "tpu.trace_stop"() : () -> ()
    %43 = vector.broadcast %cst_28 : f32 to vector<1x8x8xf32>
    %44 = arith.select %11, %42, %43 : vector<1x8x8xi1>, vector<1x8x8xf32>
    %cst_29 = arith.constant dense<0xFF800000> : vector<1x8xf32>
    %45 = vector.multi_reduction <maximumf>, %44, %cst_29 [2] : vector<1x8x8xf32> to vector<1x8xf32>
    %46 = vector.shape_cast %45 : vector<1x8xf32> to vector<1x8x1xf32>
    %47 = vector.broadcast %46 : vector<1x8x1xf32> to vector<1x8x8xf32>
    %48 = arith.subf %44, %47 : vector<1x8x8xf32>
    %49 = math.exp %48 : vector<1x8x8xf32>
    %cst_30 = arith.constant dense<0.000000e+00> : vector<1x8xf32>
    %50 = vector.multi_reduction <add>, %49, %cst_30 [2] : vector<1x8x8xf32> to vector<1x8xf32>
    %51 = vector.shape_cast %50 : vector<1x8xf32> to vector<1x8x1xf32>
    %52 = vector.broadcast %51 : vector<1x8x1xf32> to vector<1x8x8xf32>
    %53 = arith.divf %49, %52 : vector<1x8x8xf32>
    %c1 = arith.constant 1 : index
    %c0_31 = arith.constant 0 : index
    %c0_32 = arith.constant 0 : index
    %c0_33 = arith.constant 0 : index
    %54 = vector.load %arg11[%c1, %c0_31, %c0_32, %c0_33] : memref<4x1x8x8xf32, #tpu.memory_space<vmem>>, vector<1x1x8x8xf32>
    %55 = vector.shape_cast %54 : vector<1x1x8x8xf32> to vector<1x8x8xf32>
    %56 = vector.shape_cast %53 : vector<1x8x8xf32> to vector<1x1x8x8xf32>
    tpu.vector_store %arg11[%c1, %c0_31, %c0_32, %c0_33], %56 {strides = array<i32>} : memref<4x1x8x8xf32, #tpu.memory_space<vmem>>, vector<1x1x8x8xf32>,
    "tpu.trace_start"() <{level = 10 : i32, message = "bqk,bkd->bqd"}> : () -> ()
    %cst_34 = arith.constant dense<0.000000e+00> : vector<1x8x32xf32>
    %57 = tpu.matmul %53, %41, %cst_34 {dimension_numbers = #tpu.dot_dimension_numbers<[2], [1], [1], [2], [0, 0, 0, 1, 1, 2], [0], [0]>} : vector<1x8x8xf32>, vector<1x8x32xf32>, vector<1x8x32xf32> -> vector<1x8x32xf32>
    "tpu.trace_stop"() : () -> ()
    %58 = vector.shape_cast %57 : vector<1x8x32xf32> to vector<8x32xf32>
    %c0_35 = arith.constant 0 : index
    %c32 = arith.constant 32 : index
    %59 = vector.load %arg12[%c0_35, %c32] : memref<8x128xf32, #tpu.memory_space<vmem>>, vector<8x32xf32>
    tpu.vector_store %arg12[%c0_35, %c32], %58 {strides = array<i32>} : memref<8x128xf32, #tpu.memory_space<vmem>>, vector<8x32xf32>,
    %60 = vector.extract_strided_slice %2 {offsets = [0, 64], sizes = [8, 32], strides = [1, 1]} : vector<8x128xf32> to vector<8x32xf32>
    %61 = vector.shape_cast %60 : vector<8x32xf32> to vector<1x8x32xf32>
    %62 = vector.extract_strided_slice %5 {offsets = [0, 64], sizes = [8, 32], strides = [1, 1]} : vector<8x128xf32> to vector<8x32xf32>
    %63 = vector.shape_cast %62 : vector<8x32xf32> to vector<1x8x32xf32>
    %64 = vector.extract_strided_slice %8 {offsets = [0, 64], sizes = [8, 32], strides = [1, 1]} : vector<8x128xf32> to vector<8x32xf32>
    %65 = vector.shape_cast %64 : vector<8x32xf32> to vector<1x8x32xf32>
    "tpu.trace_start"() <{level = 10 : i32, message = "bqd,bkd->bqk"}> : () -> ()
    %cst_36 = arith.constant dense<0.000000e+00> : vector<1x8x8xf32>
    %66 = tpu.matmul %61, %63, %cst_36 {dimension_numbers = #tpu.dot_dimension_numbers<[2], [2], [1], [1], [0, 0, 0, 1, 1, 1], [0], [0]>} : vector<1x8x32xf32>, vector<1x8x32xf32>, vector<1x8x8xf32> -> vector<1x8x8xf32>
    %cst_37 = arith.constant -1.000000e+06 : f32
    "tpu.trace_stop"() : () -> ()
    %67 = vector.broadcast %cst_37 : f32 to vector<1x8x8xf32>
    %68 = arith.select %11, %66, %67 : vector<1x8x8xi1>, vector<1x8x8xf32>
    %cst_38 = arith.constant dense<0xFF800000> : vector<1x8xf32>
    %69 = vector.multi_reduction <maximumf>, %68, %cst_38 [2] : vector<1x8x8xf32> to vector<1x8xf32>
    %70 = vector.shape_cast %69 : vector<1x8xf32> to vector<1x8x1xf32>
    %71 = vector.broadcast %70 : vector<1x8x1xf32> to vector<1x8x8xf32>
    %72 = arith.subf %68, %71 : vector<1x8x8xf32>
    %73 = math.exp %72 : vector<1x8x8xf32>
    %cst_39 = arith.constant dense<0.000000e+00> : vector<1x8xf32>
    %74 = vector.multi_reduction <add>, %73, %cst_39 [2] : vector<1x8x8xf32> to vector<1x8xf32>
    %75 = vector.shape_cast %74 : vector<1x8xf32> to vector<1x8x1xf32>
    %76 = vector.broadcast %75 : vector<1x8x1xf32> to vector<1x8x8xf32>
    %77 = arith.divf %73, %76 : vector<1x8x8xf32>
    %c2 = arith.constant 2 : index
    %c0_40 = arith.constant 0 : index
    %c0_41 = arith.constant 0 : index
    %c0_42 = arith.constant 0 : index
    %78 = vector.load %arg11[%c2, %c0_40, %c0_41, %c0_42] : memref<4x1x8x8xf32, #tpu.memory_space<vmem>>, vector<1x1x8x8xf32>
    %79 = vector.shape_cast %78 : vector<1x1x8x8xf32> to vector<1x8x8xf32>
    %80 = vector.shape_cast %77 : vector<1x8x8xf32> to vector<1x1x8x8xf32>
    tpu.vector_store %arg11[%c2, %c0_40, %c0_41, %c0_42], %80 {strides = array<i32>} : memref<4x1x8x8xf32, #tpu.memory_space<vmem>>, vector<1x1x8x8xf32>,
    "tpu.trace_start"() <{level = 10 : i32, message = "bqk,bkd->bqd"}> : () -> ()
    %cst_43 = arith.constant dense<0.000000e+00> : vector<1x8x32xf32>
    %81 = tpu.matmul %77, %65, %cst_43 {dimension_numbers = #tpu.dot_dimension_numbers<[2], [1], [1], [2], [0, 0, 0, 1, 1, 2], [0], [0]>} : vector<1x8x8xf32>, vector<1x8x32xf32>, vector<1x8x32xf32> -> vector<1x8x32xf32>
    "tpu.trace_stop"() : () -> ()
    %82 = vector.shape_cast %81 : vector<1x8x32xf32> to vector<8x32xf32>
    %c0_44 = arith.constant 0 : index
    %c64 = arith.constant 64 : index
    %83 = vector.load %arg12[%c0_44, %c64] : memref<8x128xf32, #tpu.memory_space<vmem>>, vector<8x32xf32>
    tpu.vector_store %arg12[%c0_44, %c64], %82 {strides = array<i32>} : memref<8x128xf32, #tpu.memory_space<vmem>>, vector<8x32xf32>,
    %84 = vector.extract_strided_slice %2 {offsets = [0, 96], sizes = [8, 32], strides = [1, 1]} : vector<8x128xf32> to vector<8x32xf32>
    %85 = vector.shape_cast %84 : vector<8x32xf32> to vector<1x8x32xf32>
    %86 = vector.extract_strided_slice %5 {offsets = [0, 96], sizes = [8, 32], strides = [1, 1]} : vector<8x128xf32> to vector<8x32xf32>
    %87 = vector.shape_cast %86 : vector<8x32xf32> to vector<1x8x32xf32>
    %88 = vector.extract_strided_slice %8 {offsets = [0, 96], sizes = [8, 32], strides = [1, 1]} : vector<8x128xf32> to vector<8x32xf32>
    %89 = vector.shape_cast %88 : vector<8x32xf32> to vector<1x8x32xf32>
    "tpu.trace_start"() <{level = 10 : i32, message = "bqd,bkd->bqk"}> : () -> ()
    %cst_45 = arith.constant dense<0.000000e+00> : vector<1x8x8xf32>
    %90 = tpu.matmul %85, %87, %cst_45 {dimension_numbers = #tpu.dot_dimension_numbers<[2], [2], [1], [1], [0, 0, 0, 1, 1, 1], [0], [0]>} : vector<1x8x32xf32>, vector<1x8x32xf32>, vector<1x8x8xf32> -> vector<1x8x8xf32>
    %cst_46 = arith.constant -1.000000e+06 : f32
    "tpu.trace_stop"() : () -> ()
    %91 = vector.broadcast %cst_46 : f32 to vector<1x8x8xf32>
    %92 = arith.select %11, %90, %91 : vector<1x8x8xi1>, vector<1x8x8xf32>
    %cst_47 = arith.constant dense<0xFF800000> : vector<1x8xf32>
    %93 = vector.multi_reduction <maximumf>, %92, %cst_47 [2] : vector<1x8x8xf32> to vector<1x8xf32>
    %94 = vector.shape_cast %93 : vector<1x8xf32> to vector<1x8x1xf32>
    %95 = vector.broadcast %94 : vector<1x8x1xf32> to vector<1x8x8xf32>
    %96 = arith.subf %92, %95 : vector<1x8x8xf32>
    %97 = math.exp %96 : vector<1x8x8xf32>
    %cst_48 = arith.constant dense<0.000000e+00> : vector<1x8xf32>
    %98 = vector.multi_reduction <add>, %97, %cst_48 [2] : vector<1x8x8xf32> to vector<1x8xf32>
    %99 = vector.shape_cast %98 : vector<1x8xf32> to vector<1x8x1xf32>
    %100 = vector.broadcast %99 : vector<1x8x1xf32> to vector<1x8x8xf32>
    %101 = arith.divf %97, %100 : vector<1x8x8xf32>
    %c3 = arith.constant 3 : index
    %c0_49 = arith.constant 0 : index
    %c0_50 = arith.constant 0 : index
    %c0_51 = arith.constant 0 : index
    %102 = vector.load %arg11[%c3, %c0_49, %c0_50, %c0_51] : memref<4x1x8x8xf32, #tpu.memory_space<vmem>>, vector<1x1x8x8xf32>
    %103 = vector.shape_cast %102 : vector<1x1x8x8xf32> to vector<1x8x8xf32>
    %104 = vector.shape_cast %101 : vector<1x8x8xf32> to vector<1x1x8x8xf32>
    tpu.vector_store %arg11[%c3, %c0_49, %c0_50, %c0_51], %104 {strides = array<i32>} : memref<4x1x8x8xf32, #tpu.memory_space<vmem>>, vector<1x1x8x8xf32>,
    "tpu.trace_start"() <{level = 10 : i32, message = "bqk,bkd->bqd"}> : () -> ()
    %cst_52 = arith.constant dense<0.000000e+00> : vector<1x8x32xf32>
    %105 = tpu.matmul %101, %89, %cst_52 {dimension_numbers = #tpu.dot_dimension_numbers<[2], [1], [1], [2], [0, 0, 0, 1, 1, 2], [0], [0]>} : vector<1x8x8xf32>, vector<1x8x32xf32>, vector<1x8x32xf32> -> vector<1x8x32xf32>
    "tpu.trace_stop"() : () -> ()
    %106 = vector.shape_cast %105 : vector<1x8x32xf32> to vector<8x32xf32>
    %c0_53 = arith.constant 0 : index
    %c96 = arith.constant 96 : index
    %107 = vector.load %arg12[%c0_53, %c96] : memref<8x128xf32, #tpu.memory_space<vmem>>, vector<8x32xf32>
    tpu.vector_store %arg12[%c0_53, %c96], %106 {strides = array<i32>} : memref<8x128xf32, #tpu.memory_space<vmem>>, vector<8x32xf32>,
    %c0_54 = arith.constant 0 : index
    %c0_55 = arith.constant 0 : index
    %108 = vector.load %arg5[%c0_54, %c0_55] : memref<1x32xf32, #tpu.memory_space<vmem>>, vector<1x32xf32>
    %c0_56 = arith.constant 0 : index
    %c0_57 = arith.constant 0 : index
    %109 = vector.load %arg12[%c0_56, %c0_57] : memref<8x128xf32, #tpu.memory_space<vmem>>, vector<8x128xf32>
    %c0_58 = arith.constant 0 : index
    %c0_59 = arith.constant 0 : index
    %110 = vector.load %arg4[%c0_58, %c0_59] : memref<128x32xf32, #tpu.memory_space<vmem>>, vector<128x32xf32>
    %cst_60 = arith.constant dense<0.000000e+00> : vector<8x32xf32>
    %111 = tpu.matmul %109, %110, %cst_60 {dimension_numbers = #tpu.dot_dimension_numbers<[1], [0], [0], [1], [0, 0, 1, 1], [], []>} : vector<8x128xf32>, vector<128x32xf32>, vector<8x32xf32> -> vector<8x32xf32>
    %112 = vector.broadcast %108 : vector<1x32xf32> to vector<8x32xf32>
    %113 = arith.addf %112, %111 : vector<8x32xf32>
    %c0_61 = arith.constant 0 : index
    %c0_62 = arith.constant 0 : index
    %114 = vector.load %arg10[%c0_61, %c0_62] : memref<8x32xf32, #tpu.memory_space<vmem>>, vector<8x32xf32>
    tpu.vector_store %arg10[%c0_61, %c0_62], %113 {strides = array<i32>} : memref<8x32xf32, #tpu.memory_space<vmem>>, vector<8x32xf32>,
    return
  }
  func.func @transform_0(%arg0: i32) -> (i32, i32) {
    %c0_i32 = arith.constant 0 : i32
    %c0_i32_0 = arith.constant 0 : i32
    %c0_i32_1 = arith.constant 0 : i32
    return %c0_i32, %c0_i32_0 : i32, i32
  }
  func.func @transform_1(%arg0: i32) -> (i32, i32) {
    %c0_i32 = arith.constant 0 : i32
    %c0_i32_0 = arith.constant 0 : i32
    %c0_i32_1 = arith.constant 0 : i32
    return %c0_i32, %c0_i32_0 : i32, i32
  }
  func.func @transform_2(%arg0: i32) -> (i32, i32) {
    %c0_i32 = arith.constant 0 : i32
    %c0_i32_0 = arith.constant 0 : i32
    %c0_i32_1 = arith.constant 0 : i32
    return %c0_i32, %c0_i32_0 : i32, i32
  }
  func.func @transform_3(%arg0: i32) -> (i32, i32) {
    %c0_i32 = arith.constant 0 : i32
    %c0_i32_0 = arith.constant 0 : i32
    %c0_i32_1 = arith.constant 0 : i32
    return %c0_i32, %c0_i32_0 : i32, i32
  }
  func.func @transform_4(%arg0: i32) -> (i32, i32) {
    %c0_i32 = arith.constant 0 : i32
    %c0_i32_0 = arith.constant 0 : i32
    %c0_i32_1 = arith.constant 0 : i32
    return %c0_i32, %c0_i32_0 : i32, i32
  }
  func.func @transform_5(%arg0: i32) -> (i32, i32) {
    %c0_i32 = arith.constant 0 : i32
    %c0_i32_0 = arith.constant 0 : i32
    return %arg0, %c0_i32 : i32, i32
  }
  func.func @transform_6(%arg0: i32) -> (i32, i32) {
    %c0_i32 = arith.constant 0 : i32
    %c0_i32_0 = arith.constant 0 : i32
    return %arg0, %c0_i32 : i32, i32
  }
  func.func @transform_7(%arg0: i32) -> (i32, i32) {
    %c0_i32 = arith.constant 0 : i32
    %c0_i32_0 = arith.constant 0 : i32
    return %arg0, %c0_i32 : i32, i32
  }
  func.func @transform_8(%arg0: i32) -> (i32, i32, i32) {
    %c0_i32 = arith.constant 0 : i32
    %c0_i32_0 = arith.constant 0 : i32
    %c0_i32_1 = arith.constant 0 : i32
    return %arg0, %c0_i32, %c0_i32_0 : i32, i32, i32
  }
  func.func @transform_9(%arg0: i32) -> (i32, i32) {
    %c0_i32 = arith.constant 0 : i32
    %c0_i32_0 = arith.constant 0 : i32
    return %arg0, %c0_i32 : i32, i32
  }
  func.func @transform_10(%arg0: i32) -> (i32, i32, i32, i32) {
    %c0_i32 = arith.constant 0 : i32
    %c0_i32_0 = arith.constant 0 : i32
    %c0_i32_1 = arith.constant 0 : i32
    %c0_i32_2 = arith.constant 0 : i32
    return %c0_i32, %arg0, %c0_i32_0, %c0_i32_1 : i32, i32, i32, i32
  }
}

</mosaic_0001>

<bundles_post_ra>
// kernel: mh_self_attention_wide.1
= control target key start
LH: loop header
LB: loop body
LE: loop exit
PB: predicated region body
PF: predicated region fallthrough
CT: control target
= control target key end

     0   :  { %s1573_s0 = inlined_call_operand.vmem [shape: f32[32,128], index: 0, kind: input, shape index: {}]   ;;  %s1574_s1 = inlined_call_operand.vmem [shape: f32[32,128], index: 1, kind: input, shape index: {}]   ;;  %s1575_s2 = inlined_call_operand.vmem [shape: f32[32,128], index: 2, kind: input, shape index: {}]   ;;  %s1576_s3 = inlined_call_operand.vmem [shape: f32[128,32], index: 3, kind: input, shape index: {}]   ;;  %s1577_s4 = inlined_call_operand.vmem [shape: f32[1,32], index: 4, kind: input, shape index: {}]   ;;  %s1578_s5 = inlined_call_operand.vmem [shape: f32[16,32], index: 5, kind: input, shape index: {}]   ;;  %s1579_s6 = inlined_call_operand.vmem [shape: f32[16,32], index: 6, kind: input, shape index: {}]   ;;  %s1580_s7 = inlined_call_operand.vmem [shape: f32[16,32], index: 7, kind: input, shape index: {}]   ;;  %s1581_s8 = inlined_call_operand.vmem [shape: s8[2,8,8], index: 8, kind: input, shape index: {}]   ;;  %s1582_s9 = inlined_call_operand.hbm [shape: f32[16,32], index: 9, kind: output, shape index: {0}]   ;;  %s1583_s10 = inlined_call_operand.vmem [shape: f32[4,2,8,8], index: 10, kind: output, shape index: {1}]  }
   0x1   :  { %1584 = sst [smem:[#allocation8_spill]] %s1573_s0 }
   0x2   :  { %1585 = sst [smem:[#allocation9_spill]] %s1574_s1 }
   0x3   :  { %16 = vsyncpa [#allocation4], 0 }
   0x4   :  { %18 = vsyncpa [#allocation4 + $0x1], 0  ;;  %s1297_s13 = smov 0   ;;  %s1299_s14 = smov 0  }
   0x5   :  { %s1301_s15 = smov 0   ;;  %s1303_s16 = smov 0  }
   0x6 LB: > { %s1318_s17 = sadd.s32 4294967295, %s1236_s16   ;;  %s1080_s18 = sadd.s32 4294967294, %s1236_s16   ;;  %s1236_s16 = sphi %s1303_s16, %s1597_s16   ;;  %s1232_s15 = sphi %s1301_s15, %s1596_s15   ;;  %s1228_s14 = sphi %s1299_s14, %s1595_s14   ;;  %s1224_s13 = sphi %s1297_s13, %s1594_s13  }
   0x7   : > { %s1322_s19 = sadd.s32 1, %s1236_s16   ;;  %s240_s20 = sadd.s32 1, %s1232_s15 }
   0x8   : > { %s237_s21 = ssub.s32 %s1236_s16, %s1322_s19  ;;  %p250_p0 = scmp.ne.s32.totalorder %s1232_s15, %s1228_s14 }
   0x9   : > { %p238_p1 = scmp.eq.s32.totalorder %s237_s21, 0  ;;  %p251_p2 = scmp.eq.s32.totalorder %s1318_s17, 1 }
   0xa   : > { %p256_p3 = scmp.ne.s32.totalorder %s1228_s14, %s1224_s13  ;;  %p257_p4 = scmp.eq.s32.totalorder %s1080_s18, 1 }
   0xb   : > { %s1333_s22 = scalar_select %p238_p1, %s1232_s15, %s240_s20  }
   0xc   : > { %p1335_p5 = por %p251_p2, %p250_p0  ;;  %p1339_p6 = por %p257_p4, %p256_p3 }
   0xd   : > { %1586 = sst [smem:[#allocation7_spill]] %s1333_s22  ;;  %p1083_p7 = scmp.ge.s32.totalorder %s1236_s16, 1 }
   0xe   : > { %p344_p8 = scmp.lt.s32.totalorder %s1236_s16, 3 }
  0x10   : > { %p345_p9 = pnand %p1083_p7, %p344_p8 }
  0x11   : > { %s1589_s1 = sld [smem:[#allocation9_spill]] (!%p345_p9)  ;;  %p397_p10 = scmp.lt.s32.totalorder (!%p345_p9), %s1318_s17, 1 }
  0x12   : > { %348 = sbr.rel (%p345_p9) target bundleno = 1078 (0x436), region = 56  ;;  %s1590_s0 = sld [smem:[#allocation8_spill]] (!%p345_p9) }
  0x13   : > { %s1238_s27 = smov (!%p345_p9), 32  }
  0x17   : > { %v448_v0 = vld [vmem:[%s1589_s1 + $0x18] sm:$0xff]  ;;  %v447_v1 = vld [vmem:[%s1589_s1 + $0x10] sm:$0xff]  ;;  %v446_v4 = vld [vmem:[%s1589_s1 + $0x8] sm:$0xff]  ;;  %s1365_s26 = scalar_select %p397_p10, %s1318_s17, 1  ;;  %vm420_vm0 = vcmask 261120   ;;  %v1241_v23 = vmov 0  }
  0x18   : > { %v419_v2 = vld [vmem:[%s1590_s0 + $0x18] sm:$0xff]  ;;  %464 = vmatpush.msra.mxu1 %v448_v0  ;;  %v418_v3 = vld [vmem:[%s1590_s0 + $0x10] sm:$0xff]  ;;  %v417_v5 = vld [vmem:[%s1590_s0 + $0x8] sm:$0xff]  ;;  %vm532_vm3 = vcmask 64512  }
  0x19   : > { %436 = vmatpush.msra.mxu0 %v419_v2  ;;  %v476_v6 = vld [vmem:[%s1575_s2 + $0x18] sm:$0xff]  ;;  %v475_v7 = vld [vmem:[%s1575_s2 + $0x10] sm:$0xff]  ;;  %v445_v8 = vld [vmem:[%s1589_s1] sm:$0xff]  ;;  %s1086_s18 = sshll.u32 %s1365_s26, 3 }
  0x1a   : > { %465 = vmatpush.msra.mxu1 %v447_v1  ;;  %v416_v9 = vld [vmem:[%s1590_s0] sm:$0xff]  ;;  %492 = vmatpush.msra.mxu3 %v476_v6  ;;  %s404_s28 = scalar_lea.vmem %s1579_s6, %s1086_s18  ;;  %s400_s30 = scalar_lea.vmem %s1578_s5, %s1086_s18  ;;  %v474_v12 = vld [vmem:[%s1575_s2 + $0x8] sm:$0xff] }
  0x1b   : > { %437 = vmatpush.msra.mxu0 %v418_v3  ;;  %v444_v10 = vld [vmem:[%s404_s28] sm:$0xff]  ;;  %s408_s0 = scalar_lea.vmem %s1580_s7, %s1086_s18  ;;  %s1239_s18 = smov 64  }
  0x1c   : > { %466 = vmatpush.msra.mxu1 %v446_v4  ;;  %v415_v11 = vld [vmem:[%s400_s30] sm:$0xff]  ;;  %493 = vmatpush.msra.mxu3 %v475_v7  ;;  %s1240_s28 = smov 96  }
  0x1d   : > { %438 = vmatpush.msra.mxu0 %v417_v5  ;;  %v473_v13 = vld [vmem:[%s1575_s2] sm:$0xff] }
  0x1e   : > { %467 = vmatpush.msra.mxu1 %v445_v8  ;;  %494 = vmatpush.msra.mxu3 %v474_v12  ;;  %v472_v14 = vld [vmem:[%s408_s0] sm:$0xff]  ;;  %s1089_s0 = sshll.u32 %s1365_s26, 1  ;;  %s1445_s26 = sand.u32 1, %s1228_s14  }
  0x1f   : > { %439 = vmatpush.msra.mxu0 %v416_v9  ;;  %1091 = vmatmul.msk.f32.vlgmr.msra.gmra.mxu1 %vm420_vm0, %v444_v10  ;;  %s412_s11 = scalar_lea.vmem %s1581_s8, %s1089_s0  ;;  %s1085_s12 = sshll.u32 %s1445_s26, 5 }
  0x20   : > { %1090 = vmatmul.msk.f32.vlgmr.msra.gmra.mxu0 %vm420_vm0, %v415_v11  ;;  %495 = vmatpush.msra.mxu3 %v473_v13  ;;  %v500_v20 = vld [vmem:[%s412_s11] sm:$0x3]  ;;  %s1453_s20 = scalar_lea.vmem [#allocation5], %s1085_s12  ;;  %s888_s21 = scalar_lea.sflag [#allocation4], %s1445_s26 }
  0x21   : > { %1092 = vmatmul.msk.f32.vlgmr.msra.gmra.mxu3 %vm420_vm0, %v472_v14  ;;  %vm501_vm1 = vnez %v500_v20 }
  0x22   : > { %v528_v24 = vsel %vm501_vm1, 16843009, %v1241_v23 }
  0x23   : > { %v529_v25 = vunpack.c.0.s8 %v528_v24 }
  0x25   : > { %vm1418_vm2 = vcmp.ne.s32.totalorder %v529_v25, 0 }
  0x9c   : > { %v469_v15 = vpop.f32.mrf.mxu1 }
  0x9d   : > { %759 = vrot.lane.b32.xlu2 %v469_v15, %s1238_s27  ;;  %672 = vrot.lane.b32.xlu1 %v469_v15, %s1239_s18  ;;  %v441_v16 = vpop.f32.mrf.mxu0 }
  0x9e   : > { %584 = vrot.lane.b32.xlu0 %v469_v15, %s1240_s28  ;;  %1093 = vmatpush.xpose.msk.msrb.mxu3 %vm420_vm0, %v469_v15 }
  0xa1   : > { %1094 = vmatmul.msk.f32.vlgmr.msrb.gmra.mxu3 %vm420_vm0, %v441_v16 }
  0xa4   : > { %v1406_v17 = vpop.f32.mrf.mxu3 }
  0xa5   : > { %757 = vrot.lane.b32.xlu2 %v441_v16, %s1238_s27  ;;  %670 = vrot.lane.b32.xlu1 %v441_v16, %s1239_s18 }
  0xa6   : > { %582 = vrot.lane.b32.xlu0 %v441_v16, %s1240_s28  ;;  %576 = vmatpush.msra.mxu3 %v1406_v17 }
  0xf7   : > { %v760_v22 = vpop.permute.xlu2 %759 }
  0xff   : > { %v758_v31 = vpop.permute.xlu2 %757 }
 0x10f   : > { %v673_v18 = vpop.permute.xlu1 %672 }
 0x110   : > { %v585_v19 = vpop.permute.xlu0 %584 }
 0x111   : > { %1096 = vmatpush.xpose.msk.msrb.mxu0 %vm420_vm0, %v585_v19 }
 0x115   : > { %1100 = vmatpush.xpose.msk.msra.mxu0 %vm420_vm0, %v673_v18 }
 0x117   : > { %v671_v26 = vpop.permute.xlu1 %670 }
 0x118   : > { %v583_v21 = vpop.permute.xlu0 %582 }
 0x119   : > { %1097 = vmatmul.msk.f32.vlgmr.msrb.gmra.mxu0 %vm420_vm0, %v583_v21 }
 0x11a   : > { %1104 = vmatpush.xpose.msk.msrb.mxu0 %vm420_vm0, %v760_v22 }
 0x121   : > { %1101 = vmatmul.msk.f32.vlgmr.msra.gmra.mxu0 %vm420_vm0, %v671_v26 }
 0x124   : > { %v525_v28 = vpop.f32.mrf.mxu3 }
 0x125   : > { %v531_v29 = vsel %vm1418_vm2, %v525_v28, -1000000.0 }
 0x126   : > { %v533_v30 = vsel %vm532_vm3, %v531_v29, -inf }
 0x127   : > { %534 = vmax.xlane.f32.xlu0 %v533_v30 }
 0x129   : > { %1105 = vmatmul.msk.f32.vlgmr.msrb.gmra.mxu0 %vm420_vm0, %v758_v31 }
 0x196   : > { %v607_v32 = vpop.f32.mrf.mxu0 }
 0x197   : > { %v610_v33 = vsel %vm1418_vm2, %v607_v32, -1000000.0 }
 0x198   : > { %v611_v34 = vsel %vm532_vm3, %v610_v33, -inf }
 0x199   : > { %612 = vmax.xlane.f32.xlu1 %v611_v34 }
 0x19a   : > { %v535_v35 = vpop.xlane.xlu0 %534 }
 0x19b   : > { %v536_v36 = vsub.f32 %v531_v29, %v535_v35 }
 0x19d   : > { %v537_v37 = vmul.f32 1.442695, %v536_v36 }
 0x19e   : > { %v695_v38 = vpop.f32.mrf.mxu0 }
 0x19f   : > { %1158 = vpow2.f32 %v537_v37  ;;  %v698_v39 = vsel %vm1418_vm2, %v695_v38, -1000000.0 }
 0x1a0   : > { %v699_v40 = vsel %vm532_vm3, %v698_v39, -inf }
 0x1a1   : > { %700 = vmax.xlane.f32.xlu2 %v699_v40 }
 0x1a5   : > { %v1159_v41 = vpop.eup %1158 }
 0x1a6   : > { %v782_v42 = vpop.f32.mrf.mxu0  ;;  %v539_v43 = vsel %vm532_vm3, %v1159_v41, 0.0 }
 0x1a7   : > { %v785_v44 = vsel %vm1418_vm2, %v782_v42, -1000000.0  ;;  %540 = vadd.xlane.f32.xlu0 %v539_v43 }
 0x1a8   : > { %v786_v45 = vsel %vm532_vm3, %v785_v44, -inf }
 0x1a9   : > { %787 = vmax.xlane.f32.xlu2 %v786_v45 }
 0x20c   : > { %v613_v46 = vpop.xlane.xlu1 %612 }
 0x20d   : > { %v614_v47 = vsub.f32 %v610_v33, %v613_v46 }
 0x20f   : > { %v615_v48 = vmul.f32 1.442695, %v614_v47 }
 0x211   : > { %1160 = vpow2.f32 %v615_v48 }
 0x214   : > { %v701_v49 = vpop.xlane.xlu2 %700 }
 0x215   : > { %v702_v50 = vsub.f32 %v698_v39, %v701_v49  ;;  %v861_v49 = vld [vmem:[%s1576_s3 + $0x78] sm:$0xff] }
 0x216   : > { %862 = vmatpush.msra.mxu2 %v861_v49 }
 0x217   : > { %v1436_v51 = vpop.eup %1160  ;;  %v703_v52 = vmul.f32 1.442695, %v702_v50 }
 0x218   : > { %v617_v53 = vsel %vm532_vm3, %v1436_v51, 0.0 }
 0x219   : > { %1162 = vpow2.f32 %v703_v52  ;;  %618 = vadd.xlane.f32.xlu1 %v617_v53  ;;  %v860_v53 = vld [vmem:[%s1576_s3 + $0x70] sm:$0xff] }
 0x21a   : > { %v541_v54 = vpop.xlane.xlu0 %540  ;;  %863 = vmatpush.msra.mxu2 %v860_v53 }
 0x21b   : > { %1164 = vrcp.f32 %v541_v54  ;;  %v553_v63 = vand.u32 2147483648, %v541_v54  ;;  %v551_v1 = vand.u32 2147483647, %v541_v54  ;;  %vm547_vm5 = vweird.f32 %v541_v54 }
 0x21c   : > { %v788_v55 = vpop.xlane.xlu2 %787 }
 0x21d   : > { %v789_v56 = vsub.f32 %v785_v44, %v788_v55  ;;  %v554_v5 = vor.u32 1.1754944e-38, %v553_v63  ;;  %vm552_vm7 = vcmp.eq.f32.partialorder %v551_v1, 8.507059e+37  ;;  %v858_v55 = vld [vmem:[%s1576_s3 + $0x60] sm:$0xff]  ;;  %v848_v1 = vld [vmem:[%s1576_s3 + $0x10] sm:$0xff] }
 0x21e   : > { %v850_v63 = vld [vmem:[%s1576_s3 + $0x20] sm:$0xff] }
 0x21f   : > { %v1440_v57 = vpop.eup %1162  ;;  %v790_v58 = vmul.f32 1.442695, %v789_v56  ;;  %v857_v56 = vld [vmem:[%s1576_s3 + $0x58] sm:$0xff] }
 0x220   : > { %v705_v59 = vsel %vm532_vm3, %v1440_v57, 0.0 }
 0x221   : > { %v1165_v60 = vpop.eup %1164  ;;  %1166 = vpow2.f32 %v790_v58  ;;  %706 = vadd.xlane.f32.xlu2 %v705_v59  ;;  %v855_v58 = vld [vmem:[%s1576_s3 + $0x48] sm:$0xff]  ;;  %v854_v59 = vld [vmem:[%s1576_s3 + $0x40] sm:$0xff] }
 0x222   : > { %v543_v61 = vmul.f32 %v1165_v60, %v541_v54  ;;  %vm548_vm4 = vweird.f32 %v1165_v60  ;;  %v859_v54 = vld [vmem:[%s1576_s3 + $0x68] sm:$0xff] }
 0x223   : > { %vm549_vm6 = vmor %vm547_vm5, %vm548_vm4  ;;  %864 = vmatpush.msra.mxu2 %v859_v54 }
 0x224   : > { %v544_v62 = vsub.f32 1.0, %v543_v61  ;;  %v852_v61 = vld [vmem:[%s1576_s3 + $0x30] sm:$0xff] }
 0x225   : > { %865 = vmatpush.msra.mxu2 %v858_v55 }
 0x226   : > { %v545_v0 = vmul.f32 %v1165_v60, %v544_v62  ;;  %v851_v62 = vld [vmem:[%s1576_s3 + $0x28] sm:$0xff] }
 0x227   : > { %v1447_v2 = vpop.eup %1166  ;;  %866 = vmatpush.msra.mxu2 %v857_v56 }
 0x228   : > { %v546_v3 = vadd.f32 %v1165_v60, %v545_v0  ;;  %v792_v4 = vsel %vm532_vm3, %v1447_v2, 0.0  ;;  %v849_v0 = vld [vmem:[%s1576_s3 + $0x18] sm:$0xff] }
 0x229   : > { %793 = vadd.xlane.f32.xlu0 %v792_v4 }
 0x22a   : > { %v550_v6 = vsel %vm549_vm6, %v1165_v60, %v546_v3  ;;  %v853_v60 = vld [vmem:[%s1576_s3 + $0x38] sm:$0xff]  ;;  %v846_v3 = vld [vmem:[%s1576_s3] sm:$0xff]  ;;  %vm755_vm6 = vcmask 785920  }
 0x22b   : > { %v555_v7 = vsel %vm552_vm7, %v554_v5, %v550_v6  ;;  %vm842_vm7 = vcmask 1048320  }
 0x22c   : > { %v556_v8 = vmul.f32 %v1159_v41, %v555_v7 }
 0x22e   : > { %1095 = vmatmul.msk.f32.vlgmr.msra.gmra.mxu3 %vm532_vm3, %v556_v8  ;;  %557 = vst.msk [vmem:[%s1453_s20] sm:$0xff] %vm532_vm3, %v556_v8  ;;  %v1157_v8 = vld [vmem:[%s1577_s4] ss:$0 sm:$0xff] }
 0x232   : > { %638 = vrot.lane.b32.xlu1 %v1406_v17, %s1240_s28 }
 0x239   : > { %725 = vrot.lane.b32.xlu2 %v1406_v17, %s1239_s18 }
 0x23d   : > { %812 = vrot.lane.b32.xlu0 %v1406_v17, %s1238_s27 }
 0x28c   : > { %v619_v9 = vpop.xlane.xlu1 %618 }
 0x28d   : > { %1168 = vrcp.f32 %v619_v9  ;;  %v631_v15 = vand.u32 2147483648, %v619_v9  ;;  %v629_v16 = vand.u32 2147483647, %v619_v9  ;;  %vm625_vm9 = vweird.f32 %v619_v9 }
 0x28f   : > { %v632_v20 = vor.u32 1.1754944e-38, %v631_v15  ;;  %vm630_vm11 = vcmp.eq.f32.partialorder %v629_v16, 8.507059e+37 }
 0x293   : > { %v1169_v10 = vpop.eup %1168 }
 0x294   : > { %v621_v11 = vmul.f32 %v1169_v10, %v619_v9  ;;  %v707_v12 = vpop.xlane.xlu2 %706  ;;  %vm626_vm8 = vweird.f32 %v1169_v10 }
 0x295   : > { %1170 = vrcp.f32 %v707_v12  ;;  %vm627_vm10 = vmor %vm625_vm9, %vm626_vm8  ;;  %v719_v26 = vand.u32 2147483648, %v707_v12  ;;  %v717_v29 = vand.u32 2147483647, %v707_v12  ;;  %vm713_vm13 = vweird.f32 %v707_v12 }
 0x296   : > { %v622_v13 = vsub.f32 1.0, %v621_v11 }
 0x297   : > { %v720_v32 = vor.u32 1.1754944e-38, %v719_v26  ;;  %vm718_vm15 = vcmp.eq.f32.partialorder %v717_v29, 8.507059e+37 }
 0x298   : > { %v623_v14 = vmul.f32 %v1169_v10, %v622_v13 }
 0x29a   : > { %v624_v18 = vadd.f32 %v1169_v10, %v623_v14 }
 0x29b   : > { %v1171_v19 = vpop.eup %1170 }
 0x29c   : > { %v709_v21 = vmul.f32 %v1171_v19, %v707_v12  ;;  %v726_v22 = vpop.permute.xlu2 %725  ;;  %v794_v17 = vpop.xlane.xlu0 %793  ;;  %v628_v23 = vsel %vm627_vm10, %v1169_v10, %v624_v18  ;;  %vm714_vm12 = vweird.f32 %v1171_v19 }
 0x29d   : > { %1172 = vrcp.f32 %v794_v17  ;;  %746 = vmatpush.msrb.mxu3 %v726_v22  ;;  %v633_v25 = vsel %vm630_vm11, %v632_v20, %v628_v23  ;;  %vm715_vm14 = vmor %vm713_vm13, %vm714_vm12  ;;  %v806_v39 = vand.u32 2147483648, %v794_v17  ;;  %v804_v41 = vand.u32 2147483647, %v794_v17 }
 0x29e   : > { %v710_v24 = vsub.f32 1.0, %v709_v21  ;;  %v634_v27 = vmul.f32 %v1436_v51, %v633_v25  ;;  %vm800_vm2 = vweird.f32 %v794_v17 }
 0x29f   : > { %v807_v43 = vor.u32 1.1754944e-38, %v806_v39  ;;  %vm805_vm5 = vcmp.eq.f32.partialorder %v804_v41, 8.507059e+37 }
 0x2a0   : > { %v711_v28 = vmul.f32 %v1171_v19, %v710_v24  ;;  %1098 = vst.msk [vmem:[%s1453_s20 + $0x8] sm:$0xff] %vm532_vm3, %v634_v27 }
 0x2a2   : > { %v712_v30 = vadd.f32 %v1171_v19, %v711_v28 }
 0x2a3   : > { %v1173_v31 = vpop.eup %1172 }
 0x2a4   : > { %v716_v33 = vsel %vm715_vm14, %v1171_v19, %v712_v30  ;;  %v796_v34 = vmul.f32 %v1173_v31, %v794_v17  ;;  %v639_v35 = vpop.permute.xlu1 %638  ;;  %vm801_vm1 = vweird.f32 %v1173_v31 }
 0x2a5   : > { %v721_v36 = vsel %vm718_vm15, %v720_v32, %v716_v33  ;;  %659 = vmatpush.msrb.mxu1 %v639_v35  ;;  %vm802_vm4 = vmor %vm800_vm2, %vm801_vm1 }
 0x2a6   : > { %v797_v37 = vsub.f32 1.0, %v796_v34  ;;  %1099 = vmatmul.msk.f32.vlgmr.msrb.gmra.mxu1 %vm532_vm3, %v634_v27  ;;  %v722_v38 = vmul.f32 %v1440_v57, %v721_v36  ;;  %v856_v57 = vld [vmem:[%s1576_s3 + $0x50] sm:$0xff] }
 0x2a7   : > { %867 = vmatpush.msra.mxu2 %v856_v57 }
 0x2a8   : > { %v798_v40 = vmul.f32 %v1173_v31, %v797_v37  ;;  %1103 = vmatmul.msk.f32.vlgmr.msrb.gmra.mxu3 %vm532_vm3, %v722_v38  ;;  %1102 = vst.msk [vmem:[%s1453_s20 + $0x10] sm:$0xff] %vm532_vm3, %v722_v38 }
 0x2a9   : > { %868 = vmatpush.msra.mxu2 %v855_v58 }
 0x2aa   : > { %v799_v42 = vadd.f32 %v1173_v31, %v798_v40 }
 0x2ab   : > { %869 = vmatpush.msra.mxu2 %v854_v59 }
 0x2ac   : > { %v803_v44 = vsel %vm802_vm4, %v1173_v31, %v799_v42 }
 0x2ad   : > { %v808_v45 = vsel %vm805_vm5, %v807_v43, %v803_v44  ;;  %870 = vmatpush.msra.mxu2 %v853_v60 }
 0x2ae   : > { %v809_v46 = vmul.f32 %v1447_v2, %v808_v45  ;;  %v847_v2 = vld [vmem:[%s1576_s3 + $0x8] sm:$0xff] }
 0x2af   : > { %v813_v47 = vpop.permute.xlu0 %812  ;;  %871 = vmatpush.msra.mxu2 %v852_v61 }
 0x2b0   : > { %833 = vmatpush.msra.mxu1 %v813_v47  ;;  %1106 = vst.msk [vmem:[%s1453_s20 + $0x18] sm:$0xff] %vm532_vm3, %v809_v46 }
 0x2b1   : > { %v578_v48 = vpop.f32.mrf.mxu3  ;;  %1107 = vmatmul.msk.f32.vlgmr.msra.gmra.mxu1 %vm532_vm3, %v809_v46  ;;  %872 = vmatpush.msra.mxu2 %v851_v62  ;;  %vm668_vm3 = vcmask 523520  }
 0x2b2   : > { %581 = vst.msk [vmem:[#allocation2] sm:$0xff] %vm420_vm0, %v578_v48 }
 0x2b3   : > { %873 = vmatpush.msra.mxu2 %v850_v63 }
 0x2b5   : > { %874 = vmatpush.msra.mxu2 %v849_v0 }
 0x2b7   : > { %875 = vmatpush.msra.mxu2 %v848_v1 }
 0x2b9   : > { %876 = vmatpush.msra.mxu2 %v847_v2 }
 0x2bb   : > { %877 = vmatpush.msra.mxu2 %v846_v3 }
 0x323   : > { %v661_v50 = vpop.f32.mrf.mxu1 }
 0x324   : > { %665 = vrot.lane.b32.xlu1 %v661_v50, %s1238_s27 }
 0x32b   : > { %v748_v51 = vpop.f32.mrf.mxu3 }
 0x32c   : > { %752 = vrot.lane.b32.xlu0 %v748_v51, %s1239_s18  ;;  %s1084_s18 = sshll.u32 %s1445_s26, 3 }
 0x32d   : > { %s390_s11 = scalar_lea.vmem [#allocation3], %s1084_s18  ;;  %s1194_s18 = scalar_lea.hbm %s1582_s9, 16 }
 0x32e   : > { %v835_v52 = vpop.f32.mrf.mxu1  ;;  %s904_s12 = sshll.u32 %s390_s11, 4  ;;  %s905_s12 = int_to_ptr.vmem [resolvable:$true] %s904_s12 }
 0x32f   : > { %839 = vrot.lane.b32.xlu2 %v835_v52, %s1240_s28  ;;  %s1110_s28 = sshll.u32 %s1318_s17, 3 }
 0x330   : > { %s902_s0 = scalar_lea.hbm %s1582_s9, %s1110_s28 }
 0x331   : > { %s906_s27 = sshll.u32 %s902_s0, 4  ;;  %s907_s27 = int_to_ptr.hbm [resolvable:$true] %s906_s27 }
 0x332   : > { %s1188_s17 = sshra.s32 %s907_s27, 4  ;;  %s1189_s17 = int_to_ptr.hbm [resolvable:$true] %s1188_s17 }
 0x333   : > { %s1190_s1 = scalar_lea.hbm %s1189_s17, 8  ;;  %p1195_p0 = scmp.lt.s32.totalorder %s1189_s17, %s1582_s9 }
 0x334   : > { %p1191_p11 = scmp.ne.s32.totalorder %s1189_s17, %s1190_s1  ;;  %p1196_p1 = scmp.lt.s32.totalorder %s1194_s18, %s1190_s1 }
 0x336   : > { %p1192_p12 = pnand %p1191_p11, %p1335_p5  ;;  %p1197_p2 = por %p1196_p1, %p1195_p0 }
 0x338   : > { %p1193_p13 = pneg %p1192_p12 }
 0x33a   : > { %p1198_p3 = pnand %p1197_p2, %p1193_p13 }
 0x389   : > { %v840_v6 = vpop.permute.xlu2 %839 }
 0x396   : > { %v666_v4 = vpop.permute.xlu1 %665 }
 0x397   : > { %669 = vst.msk [vmem:[#allocation2] sm:$0xff] %vm668_vm3, %v666_v4 }
 0x39e   : > { %v753_v5 = vpop.permute.xlu0 %752 }
 0x39f   : > { %756 = vst.msk [vmem:[#allocation2] sm:$0xff] %vm755_vm6, %v753_v5 }
 0x3a0   : > { %843 = vst.msk [vmem:[#allocation2] sm:$0xff] %vm842_vm7, %v840_v6 }
 0x3a7   : > { %v845_v7 = vld [vmem:[#allocation2] sm:$0xff] }
 0x3a8   : > { %878 = vmatmul.f32.vlgmr.msra.gmra.mxu2 %v845_v7 }
 0x42b   : > { %v879_v9 = vpop.f32.mrf.mxu2 }
 0x42c   : > { %v885_v10 = vadd.f32 %v1157_v8, %v879_v9 }
 0x42e   : > { %886 = vst.msk [vmem:[%s390_s11] sm:$0xff] %vm420_vm0, %v885_v10 }
 0x42f   : > { %1201 = shalt.err (!%p1198_p3)
}
 0x430   : > { %1114 = dma.vmem_to_hbm [thread:$0]  (%p1335_p5), %s905_s12, 128, %s907_s27, %s888_s21   ;;  %v949_v11 = vld [vmem:[%s1453_s20] sm:$0xff] (%p1335_p5)  ;;  %v951_v12 = vld [vmem:[%s1453_s20 + $0x8] sm:$0xff] (%p1335_p5)  ;;  %v953_v13 = vld [vmem:[%s1453_s20 + $0x10] sm:$0xff] (%p1335_p5) }
 0x431   : > { %912 = sbr.rel (!%p1335_p5) target bundleno = 1078 (0x436), region = 64  ;;  %s914_s11 = scalar_lea.vmem (%p1335_p5), %s1583_s10, %s1110_s28  ;;  %v955_v14 = vld [vmem:[%s1453_s20 + $0x18] sm:$0xff] (%p1335_p5) }
 0x432   : > { %950 = vst [vmem:[%s914_s11] sm:$0xff] (%p1335_p5), %v949_v11 }
 0x433   : > { %952 = vst [vmem:[%s914_s11 + $0x10] sm:$0xff] (%p1335_p5), %v951_v12 }
 0x434   : > { %954 = vst [vmem:[%s914_s11 + $0x20] sm:$0xff] (%p1335_p5), %v953_v13 }
 0x435   : > { %956 = vst [vmem:[%s914_s11 + $0x30] sm:$0xff] (%p1335_p5), %v955_v14 }
 0x436 PF: > { %p1120_p4 = scmp.ge.s32.totalorder %s1236_s16, 2  ;;  %s968_s1 = sand.u32 1, %s1224_s13  }
 0x437   : > { %s969_s23 = scalar_lea.sflag [#allocation4], %s968_s1 }
 0x438   : > { %p1117_p5 = pnand %p1120_p4, %p1339_p6 }
 0x43a   : > { %p1118_p7 = pneg %p1117_p5 }
 0x43c   : > { %1219 = dma.done.wait (%p1118_p7), %s969_s23, 128  }
 0x43d   : > { %1221 = vsyncadd (%p1118_p7), %s969_s23, 4294967168  ;;  %s1593_s20 = sld [smem:[#allocation7_spill]]  ;;  %p21_p8 = scmp.ge.s32.totalorder %s1322_s19, 4  }
 0x43e   : > { %s1594_s13 = smov %s1228_s14  ;;  %s1595_s14 = smov %s1232_s15 }
 0x43f   : > { %s1597_s16 = smov %s1322_s19  ;;  %23 = sbr.rel (!%p21_p8) target bundleno = 6 (0x6), region = 153 }
 0x443   : > { %s1596_s15 = smov %s1593_s20 }
 0x444   :  { %982 = vsyncpa [#allocation4], 1 }
 0x445   :  { %984 = vsyncpa [#allocation4 + $0x1], 1 }

</bundles_post_ra>
